<compile_context>
chip_gen: v7x
topology: tpu7x:2x2x1
jax: 0.10.0
libtpu: 0.0.40
codegen_flags: <defaults>
</compile_context>

<pallas_src>
import jax
import jax.numpy as jnp
from jax.experimental import pallas as pl
from jax.experimental.pallas import tpu as pltpu

N_DIPOLES = 1
DETERMINE_AREA = False
OUT_DIM = (4 if DETERMINE_AREA else 3) * N_DIPOLES

# Original (PyTorch) layer widths.
SIZES = [231, 180, 120, 84, 16, OUT_DIM]


def _round_up(n: int, m: int) -> int:
    return ((n + m - 1) // m) * m


IN_DIM = SIZES[0]                                       # 231 (kept unpadded)
PADDED_OUT = [_round_up(s, 128) for s in SIZES[1:]]     # [256, 128, 128, 128, 128]
P_OUT = PADDED_OUT[-1]                                  # 128 (lane-dense output store)


def _mlp_kernel(x_ref,
                w1_ref, b1_ref,
                w2_ref, b2_ref,
                w3_ref, b3_ref,
                w4_ref, b4_ref,
                w5_ref, b5_ref,
                o_ref):
    """Whole forward pass on one batch tile; weights/biases are VMEM-resident.

    x = relu(x @ W1 + b1); x = tanh(x @ W2 + b2); x = tanh(x @ W3 + b3)
    x = tanh(x @ W4 + b4); x = x @ W5 + b5
    """
    w_dtype = w1_ref.dtype  # bf16 weights -> bf16 MXU operands, f32 accumulate

    h = jnp.dot(x_ref[...].astype(w_dtype), w1_ref[...],
                preferred_element_type=jnp.float32)
    h = jnp.maximum(h + b1_ref[...], 0.0)

    h = jnp.dot(h.astype(w_dtype), w2_ref[...],
                preferred_element_type=jnp.float32)
    h = jnp.tanh(h + b2_ref[...])

    h = jnp.dot(h.astype(w_dtype), w3_ref[...],
                preferred_element_type=jnp.float32)
    h = jnp.tanh(h + b3_ref[...])

    h = jnp.dot(h.astype(w_dtype), w4_ref[...],
                preferred_element_type=jnp.float32)
    h = jnp.tanh(h + b4_ref[...])

    h = jnp.dot(h.astype(w_dtype), w5_ref[...],
                preferred_element_type=jnp.float32)
    o_ref[...] = (h + b5_ref[...]).astype(o_ref.dtype)


def _choose_tile(batch: int, target: int = 1024):
    """Batch tile (multiple of 8) with <1 tile of waste and an even grid when >1."""
    tile_b = min(target, _round_up(batch, 8))
    num_tiles = pl.cdiv(batch, tile_b)
    if num_tiles > 1 and num_tiles % 2 == 1:
        num_tiles += 1  # v7x: even step count splits cleanly across 2 TensorCores
    tile_b = _round_up(pl.cdiv(batch, num_tiles), 8)
    num_tiles = pl.cdiv(batch, tile_b)
    return tile_b, num_tiles


@jax.jit
def net_forward(x, padded_params):
    """x: [batch, 231] f32.  padded_params: list of (W[in_p, out_p], b[1, out_p])."""
    batch, _ = x.shape
    tile_b, num_tiles = _choose_tile(batch)

    flat_args = []
    param_specs = []
    for w, b in padded_params:
        flat_args.extend([w, b])
        # Full-array blocks pinned at (0, 0) => DMA'd once, resident across steps.
        param_specs.append(pl.BlockSpec(w.shape, lambda i: (0, 0)))
        param_specs.append(pl.BlockSpec(b.shape, lambda i: (0, 0)))

    # Advisory cost for XLA's scheduler (real widths, not padded).
    flops = 2 * batch * sum(SIZES[i] * SIZES[i + 1] for i in range(5))
    transcendentals = batch * (SIZES[2] + SIZES[3] + SIZES[4])  # 3 tanh layers
    weight_bytes = sum(int(w.size) * w.dtype.itemsize + int(b.size) * b.dtype.itemsize
                       for w, b in padded_params)
    bytes_accessed = (int(x.size) * x.dtype.itemsize
                      + batch * P_OUT * 4
                      + weight_bytes)

    out = pl.pallas_call(
        _mlp_kernel,
        out_shape=jax.ShapeDtypeStruct((batch, P_OUT), jnp.float32),
        grid=(num_tiles,),
        in_specs=[pl.BlockSpec((tile_b, IN_DIM), lambda i: (i, 0))] + param_specs,
        out_specs=pl.BlockSpec((tile_b, P_OUT), lambda i: (i, 0)),
        compiler_params=pltpu.CompilerParams(
            dimension_semantics=("parallel",),      # shard batch tiles over TCs
            vmem_limit_bytes=32 * 1024 * 1024,      # headroom on v5e's 16 MiB default
        ),
        cost_estimate=pl.CostEstimate(
            flops=flops,
            transcendentals=transcendentals,
            bytes_accessed=bytes_accessed,
        ),
    )(x, *flat_args)

    return out[:, :OUT_DIM]


def init_params(key):
    """PyTorch nn.Linear-style init (uniform +/- 1/sqrt(fan_in)), original sizes.

    Weights are stored [in, out] (transposed from PyTorch) so y = x @ W + b.
    """
    params = []
    for i in range(len(SIZES) - 1):
        fan_in, fan_out = SIZES[i], SIZES[i + 1]
        key, kw, kb = jax.random.split(key, 3)
        bound = 1.0 / jnp.sqrt(jnp.float32(fan_in))
        w = jax.random.uniform(kw, (fan_in, fan_out), jnp.float32, -bound, bound)
        b = jax.random.uniform(kb, (1, fan_out), jnp.float32, -bound, bound)
        params.append((w, b))
    return params


def pad_params(params, dtype=jnp.bfloat16):
    """Zero-pad weights/biases to lane-aligned *output* widths, once, ahead of time.

    Layer-1 keeps its true 231 contraction rows (input streamed unpadded).
    bf16 weights are the default (MXU-native on v5e/v6e/v7x, half the weight
    DMA); biases stay f32 for the VPU/EUP element-wise path.
    """
    padded = []
    for i, (w, b) in enumerate(params):
        p_in = w.shape[0] if i == 0 else PADDED_OUT[i - 1]
        p_out = PADDED_OUT[i]
        wp = jnp.zeros((p_in, p_out), dtype).at[:w.shape[0], :w.shape[1]].set(
            w.astype(dtype))
        bp = jnp.zeros((1, p_out), jnp.float32).at[:, :b.shape[1]].set(b)
        padded.append((wp, bp))
    return padded


def reference_forward(x, params):
    """Pure-JAX f32 reference (original, unpadded widths)."""
    h = jnp.maximum(x @ params[0][0] + params[0][1], 0.0)
    h = jnp.tanh(h @ params[1][0] + params[1][1])
    h = jnp.tanh(h @ params[2][0] + params[2][1])
    h = jnp.tanh(h @ params[3][0] + params[3][1])
    return h @ params[4][0] + params[4][1]


if __name__ == "__main__":
    key = jax.random.PRNGKey(0)
    key, kx1, kx2 = jax.random.split(key, 3)

    params = init_params(key)
    padded_params = pad_params(params, dtype=jnp.bfloat16)

    # Small batch (typical per-sample inference shape for this module).
    x_small = jax.random.normal(kx1, (8, IN_DIM), jnp.float32)
    out_small = jax.block_until_ready(net_forward(x_small, padded_params))
    ref_small = reference_forward(x_small, params)
    assert out_small.shape == (8, OUT_DIM), out_small.shape
    assert jnp.allclose(out_small, ref_small, atol=5e-2, rtol=5e-2), \
        "small-batch mismatch vs f32 reference (beyond bf16 tolerance)"

    # Larger, non-multiple batch exercises the cdiv grid + masked partial block.
    x_big = jax.random.normal(kx2, (1030, IN_DIM), jnp.float32)
    out_big = jax.block_until_ready(net_forward(x_big, padded_params))
    ref_big = reference_forward(x_big, params)
    assert out_big.shape == (1030, OUT_DIM), out_big.shape
    assert jnp.allclose(out_big, ref_big, atol=5e-2, rtol=5e-2), \
        "large-batch mismatch vs f32 reference (beyond bf16 tolerance)"

    print("KERNEL_OK")
</pallas_src>

<mosaic_0001>
module attributes {stable_mosaic.version = 11 : i64} {
  func.func @_mlp_kernel(%arg0: i32, %arg1: memref<8x231xf32, #tpu.memory_space<vmem>>, %arg2: memref<231x256xbf16, #tpu.memory_space<vmem>>, %arg3: memref<1x256xf32, #tpu.memory_space<vmem>>, %arg4: memref<256x128xbf16, #tpu.memory_space<vmem>>, %arg5: memref<1x128xf32, #tpu.memory_space<vmem>>, %arg6: memref<128x128xbf16, #tpu.memory_space<vmem>>, %arg7: memref<1x128xf32, #tpu.memory_space<vmem>>, %arg8: memref<128x128xbf16, #tpu.memory_space<vmem>>, %arg9: memref<1x128xf32, #tpu.memory_space<vmem>>, %arg10: memref<128x128xbf16, #tpu.memory_space<vmem>>, %arg11: memref<1x128xf32, #tpu.memory_space<vmem>>, %arg12: memref<8x128xf32, #tpu.memory_space<vmem>>) attributes {dimension_semantics = [#tpu.dimension_semantics<parallel>], iteration_bounds = array<i64: 1>, scalar_prefetch = 0 : i64, scratch_operands = 0 : i64, tpu.core_type = #tpu.core_type<tc>, window_params = [{transform_indices = @transform_0, window_bounds = array<i64: 8, 231>}, {pipeline_mode = #tpu.pipeline_mode<synchronous>, transform_indices = @transform_1, window_bounds = array<i64: 231, 256>}, {pipeline_mode = #tpu.pipeline_mode<synchronous>, transform_indices = @transform_2, window_bounds = array<i64: 1, 256>}, {pipeline_mode = #tpu.pipeline_mode<synchronous>, transform_indices = @transform_3, window_bounds = array<i64: 256, 128>}, {pipeline_mode = #tpu.pipeline_mode<synchronous>, transform_indices = @transform_4, window_bounds = array<i64: 1, 128>}, {pipeline_mode = #tpu.pipeline_mode<synchronous>, transform_indices = @transform_5, window_bounds = array<i64: 128, 128>}, {pipeline_mode = #tpu.pipeline_mode<synchronous>, transform_indices = @transform_6, window_bounds = array<i64: 1, 128>}, {pipeline_mode = #tpu.pipeline_mode<synchronous>, transform_indices = @transform_7, window_bounds = array<i64: 128, 128>}, {pipeline_mode = #tpu.pipeline_mode<synchronous>, transform_indices = @transform_8, window_bounds = array<i64: 1, 128>}, {pipeline_mode = #tpu.pipeline_mode<synchronous>, transform_indices = @transform_9, window_bounds = array<i64: 128, 128>}, {pipeline_mode = #tpu.pipeline_mode<synchronous>, transform_indices = @transform_10, window_bounds = array<i64: 1, 128>}, {transform_indices = @transform_11, window_bounds = array<i64: 8, 128>}]} {
    %c0 = arith.constant 0 : index
    %c0_0 = arith.constant 0 : index
    %0 = vector.load %arg1[%c0, %c0_0] : memref<8x231xf32, #tpu.memory_space<vmem>>, vector<8x231xf32>
    %1 = arith.truncf %0 : vector<8x231xf32> to vector<8x231xbf16>
    %c0_1 = arith.constant 0 : index
    %c0_2 = arith.constant 0 : index
    %2 = vector.load %arg2[%c0_1, %c0_2] : memref<231x256xbf16, #tpu.memory_space<vmem>>, vector<231x256xbf16>
    %cst = arith.constant dense<0.000000e+00> : vector<8x256xf32>
    %3 = tpu.matmul %1, %2, %cst {dimension_numbers = #tpu.dot_dimension_numbers<[1], [0], [0], [1], [0, 0, 1, 1], [], []>} : vector<8x231xbf16>, vector<231x256xbf16>, vector<8x256xf32> -> vector<8x256xf32>
    %c0_3 = arith.constant 0 : index
    %c0_4 = arith.constant 0 : index
    %4 = vector.load %arg3[%c0_3, %c0_4] : memref<1x256xf32, #tpu.memory_space<vmem>>, vector<1x256xf32>
    %5 = vector.broadcast %4 : vector<1x256xf32> to vector<8x256xf32>
    %6 = arith.addf %3, %5 : vector<8x256xf32>
    %cst_5 = arith.constant 0.000000e+00 : f32
    %7 = vector.broadcast %cst_5 : f32 to vector<8x256xf32>
    %8 = arith.maximumf %6, %7 : vector<8x256xf32>
    %9 = arith.truncf %8 : vector<8x256xf32> to vector<8x256xbf16>
    %c0_6 = arith.constant 0 : index
    %c0_7 = arith.constant 0 : index
    %10 = vector.load %arg4[%c0_6, %c0_7] : memref<256x128xbf16, #tpu.memory_space<vmem>>, vector<256x128xbf16>
    %cst_8 = arith.constant dense<0.000000e+00> : vector<8x128xf32>
    %11 = tpu.matmul %9, %10, %cst_8 {dimension_numbers = #tpu.dot_dimension_numbers<[1], [0], [0], [1], [0, 0, 1, 1], [], []>} : vector<8x256xbf16>, vector<256x128xbf16>, vector<8x128xf32> -> vector<8x128xf32>
    %c0_9 = arith.constant 0 : index
    %c0_10 = arith.constant 0 : index
    %12 = vector.load %arg5[%c0_9, %c0_10] : memref<1x128xf32, #tpu.memory_space<vmem>>, vector<1x128xf32>
    %13 = vector.broadcast %12 : vector<1x128xf32> to vector<8x128xf32>
    %14 = arith.addf %11, %13 : vector<8x128xf32>
    %15 = math.tanh %14 : vector<8x128xf32>
    %16 = arith.truncf %15 : vector<8x128xf32> to vector<8x128xbf16>
    %c0_11 = arith.constant 0 : index
    %c0_12 = arith.constant 0 : index
    %17 = vector.load %arg6[%c0_11, %c0_12] : memref<128x128xbf16, #tpu.memory_space<vmem>>, vector<128x128xbf16>
    %cst_13 = arith.constant dense<0.000000e+00> : vector<8x128xf32>
    %18 = tpu.matmul %16, %17, %cst_13 {dimension_numbers = #tpu.dot_dimension_numbers<[1], [0], [0], [1], [0, 0, 1, 1], [], []>} : vector<8x128xbf16>, vector<128x128xbf16>, vector<8x128xf32> -> vector<8x128xf32>
    %c0_14 = arith.constant 0 : index
    %c0_15 = arith.constant 0 : index
    %19 = vector.load %arg7[%c0_14, %c0_15] : memref<1x128xf32, #tpu.memory_space<vmem>>, vector<1x128xf32>
    %20 = vector.broadcast %19 : vector<1x128xf32> to vector<8x128xf32>
    %21 = arith.addf %18, %20 : vector<8x128xf32>
    %22 = math.tanh %21 : vector<8x128xf32>
    %23 = arith.truncf %22 : vector<8x128xf32> to vector<8x128xbf16>
    %c0_16 = arith.constant 0 : index
    %c0_17 = arith.constant 0 : index
    %24 = vector.load %arg8[%c0_16, %c0_17] : memref<128x128xbf16, #tpu.memory_space<vmem>>, vector<128x128xbf16>
    %cst_18 = arith.constant dense<0.000000e+00> : vector<8x128xf32>
    %25 = tpu.matmul %23, %24, %cst_18 {dimension_numbers = #tpu.dot_dimension_numbers<[1], [0], [0], [1], [0, 0, 1, 1], [], []>} : vector<8x128xbf16>, vector<128x128xbf16>, vector<8x128xf32> -> vector<8x128xf32>
    %c0_19 = arith.constant 0 : index
    %c0_20 = arith.constant 0 : index
    %26 = vector.load %arg9[%c0_19, %c0_20] : memref<1x128xf32, #tpu.memory_space<vmem>>, vector<1x128xf32>
    %27 = vector.broadcast %26 : vector<1x128xf32> to vector<8x128xf32>
    %28 = arith.addf %25, %27 : vector<8x128xf32>
    %29 = math.tanh %28 : vector<8x128xf32>
    %30 = arith.truncf %29 : vector<8x128xf32> to vector<8x128xbf16>
    %c0_21 = arith.constant 0 : index
    %c0_22 = arith.constant 0 : index
    %31 = vector.load %arg10[%c0_21, %c0_22] : memref<128x128xbf16, #tpu.memory_space<vmem>>, vector<128x128xbf16>
    %cst_23 = arith.constant dense<0.000000e+00> : vector<8x128xf32>
    %32 = tpu.matmul %30, %31, %cst_23 {dimension_numbers = #tpu.dot_dimension_numbers<[1], [0], [0], [1], [0, 0, 1, 1], [], []>} : vector<8x128xbf16>, vector<128x128xbf16>, vector<8x128xf32> -> vector<8x128xf32>
    %c0_24 = arith.constant 0 : index
    %c0_25 = arith.constant 0 : index
    %33 = vector.load %arg11[%c0_24, %c0_25] : memref<1x128xf32, #tpu.memory_space<vmem>>, vector<1x128xf32>
    %34 = vector.broadcast %33 : vector<1x128xf32> to vector<8x128xf32>
    %35 = arith.addf %32, %34 : vector<8x128xf32>
    %c0_26 = arith.constant 0 : index
    %c0_27 = arith.constant 0 : index
    %36 = vector.load %arg12[%c0_26, %c0_27] : memref<8x128xf32, #tpu.memory_space<vmem>>, vector<8x128xf32>
    tpu.vector_store %arg12[%c0_26, %c0_27], %35 {strides = array<i32>} : memref<8x128xf32, #tpu.memory_space<vmem>>, vector<8x128xf32>,
    return
  }
  func.func @transform_0(%arg0: i32) -> (i32, i32) {
    %c0_i32 = arith.constant 0 : i32
    %c0_i32_0 = arith.constant 0 : i32
    return %arg0, %c0_i32 : i32, i32
  }
  func.func @transform_1(%arg0: i32) -> (i32, i32) {
    %c0_i32 = arith.constant 0 : i32
    %c0_i32_0 = arith.constant 0 : i32
    %c0_i32_1 = arith.constant 0 : i32
    return %c0_i32, %c0_i32_0 : i32, i32
  }
  func.func @transform_2(%arg0: i32) -> (i32, i32) {
    %c0_i32 = arith.constant 0 : i32
    %c0_i32_0 = arith.constant 0 : i32
    %c0_i32_1 = arith.constant 0 : i32
    return %c0_i32, %c0_i32_0 : i32, i32
  }
  func.func @transform_3(%arg0: i32) -> (i32, i32) {
    %c0_i32 = arith.constant 0 : i32
    %c0_i32_0 = arith.constant 0 : i32
    %c0_i32_1 = arith.constant 0 : i32
    return %c0_i32, %c0_i32_0 : i32, i32
  }
  func.func @transform_4(%arg0: i32) -> (i32, i32) {
    %c0_i32 = arith.constant 0 : i32
    %c0_i32_0 = arith.constant 0 : i32
    %c0_i32_1 = arith.constant 0 : i32
    return %c0_i32, %c0_i32_0 : i32, i32
  }
  func.func @transform_5(%arg0: i32) -> (i32, i32) {
    %c0_i32 = arith.constant 0 : i32
    %c0_i32_0 = arith.constant 0 : i32
    %c0_i32_1 = arith.constant 0 : i32
    return %c0_i32, %c0_i32_0 : i32, i32
  }
  func.func @transform_6(%arg0: i32) -> (i32, i32) {
    %c0_i32 = arith.constant 0 : i32
    %c0_i32_0 = arith.constant 0 : i32
    %c0_i32_1 = arith.constant 0 : i32
    return %c0_i32, %c0_i32_0 : i32, i32
  }
  func.func @transform_7(%arg0: i32) -> (i32, i32) {
    %c0_i32 = arith.constant 0 : i32
    %c0_i32_0 = arith.constant 0 : i32
    %c0_i32_1 = arith.constant 0 : i32
    return %c0_i32, %c0_i32_0 : i32, i32
  }
  func.func @transform_8(%arg0: i32) -> (i32, i32) {
    %c0_i32 = arith.constant 0 : i32
    %c0_i32_0 = arith.constant 0 : i32
    %c0_i32_1 = arith.constant 0 : i32
    return %c0_i32, %c0_i32_0 : i32, i32
  }
  func.func @transform_9(%arg0: i32) -> (i32, i32) {
    %c0_i32 = arith.constant 0 : i32
    %c0_i32_0 = arith.constant 0 : i32
    %c0_i32_1 = arith.constant 0 : i32
    return %c0_i32, %c0_i32_0 : i32, i32
  }
  func.func @transform_10(%arg0: i32) -> (i32, i32) {
    %c0_i32 = arith.constant 0 : i32
    %c0_i32_0 = arith.constant 0 : i32
    %c0_i32_1 = arith.constant 0 : i32
    return %c0_i32, %c0_i32_0 : i32, i32
  }
  func.func @transform_11(%arg0: i32) -> (i32, i32) {
    %c0_i32 = arith.constant 0 : i32
    %c0_i32_0 = arith.constant 0 : i32
    return %arg0, %c0_i32 : i32, i32
  }
}

</mosaic_0001>

<bundles_post_ra>
// kernel: net_forward.1
= control target key start
LH: loop header
LB: loop body
LE: loop exit
PB: predicated region body
PF: predicated region fallthrough
CT: control target
= control target key end

     0   :  { %16 = vsyncpa [#allocation3], 0  ;;  %s1523_s0 = inlined_call_operand.hbm [shape: f32[8,231], index: 0, kind: input, shape index: {}]   ;;  %s1524_s1 = inlined_call_operand.hbm [shape: bf16[231,256], index: 1, kind: input, shape index: {}]   ;;  %s1525_s2 = inlined_call_operand.vmem [shape: f32[1,256], index: 2, kind: input, shape index: {}]   ;;  %s1526_s3 = inlined_call_operand.hbm [shape: bf16[256,128], index: 3, kind: input, shape index: {}]   ;;  %s1527_s4 = inlined_call_operand.vmem [shape: f32[1,128], index: 4, kind: input, shape index: {}]   ;;  %s1528_s5 = inlined_call_operand.hbm [shape: bf16[128,128], index: 5, kind: input, shape index: {}]   ;;  %s1529_s6 = inlined_call_operand.vmem [shape: f32[1,128], index: 6, kind: input, shape index: {}]   ;;  %s1530_s7 = inlined_call_operand.hbm [shape: bf16[128,128], index: 7, kind: input, shape index: {}]   ;;  %s1531_s8 = inlined_call_operand.vmem [shape: f32[1,128], index: 8, kind: input, shape index: {}]   ;;  %s1532_s9 = inlined_call_operand.hbm [shape: bf16[128,128], index: 9, kind: input, shape index: {}]   ;;  %s1533_s10 = inlined_call_operand.vmem [shape: f32[1,128], index: 10, kind: input, shape index: {}]   ;;  %s1534_s11 = inlined_call_operand.vmem [shape: f32[8,128], index: 11, kind: output, shape index: {}]  }
   0x1   :  { %17 = vsyncpa [#allocation5], 0 }
   0x2   :  { %18 = vsyncpa [#allocation8], 0 }
   0x3   :  { %19 = vsyncpa [#allocation11], 0  ;;  %s1318_s17 = smov [#allocation4]   ;;  %s1178_s21 = scalar_lea.hbm %s1524_s1, 3712 }
   0x4   :  { %s35_s18 = sshll.u32 %s1318_s17, 4  ;;  %p1179_p0 = scmp.ne.s32.totalorder %s1524_s1, %s1178_s21  ;;  %s36_s18 = int_to_ptr.vmem [resolvable:$true] %s35_s18 }
   0x5   :  { %p1182_p1 = scmp.lt.u32.totalorder %s1178_s21, %s1524_s1 }
   0x7   :  { %p1184_p2 = pnand %p1182_p1, %p1179_p0 }
   0x9   :  { %1187 = shalt.err (!%p1184_p2)
}
   0xa   :  { %s1188_s26 = scalar_lea.vmem %s36_s18, 3712  ;;  %p1193_p4 = scmp.lt.s32.totalorder %s36_s18, %s36_s18 }
   0xb   :  { %p1189_p3 = scmp.ne.s32.totalorder %s36_s18, %s1188_s26  ;;  %p1194_p5 = scmp.lt.s32.totalorder %s1188_s26, %s1188_s26 }
   0xd   :  { %p1195_p6 = por %p1194_p5, %p1193_p4 }
   0xf   :  { %p1196_p7 = pnand %p1195_p6, %p1189_p3 }
  0x11   :  { %1199 = shalt.err (!%p1196_p7)
}
  0x12   :  { %s1319_s27 = smov 128   ;;  %s1320_s28 = smov 8  }
  0x13   :  { %41 = dma.hbm_to_vmem [thread:$0]  %s1524_s1, 3712, %s36_s18, [#allocation5], %s1319_s27, %s1319_s27, %s1320_s28  }
  0x14   :  { %s1321_s12 = smov [#allocation7]   ;;  %s1322_s14 = smov [#allocation2]  }
  0x15   :  { %s63_s13 = sshll.u32 %s1321_s12, 4  ;;  %s26_s15 = sshll.u32 %s1322_s14, 4  ;;  %s64_s13 = int_to_ptr.vmem [resolvable:$true] %s63_s13  ;;  %s27_s15 = int_to_ptr.vmem [resolvable:$true] %s26_s15 }
  0x16   :  { %s1200_s19 = scalar_lea.hbm %s1528_s5, 1024 }
  0x17   :  { %p1201_p8 = scmp.ne.s32.totalorder %s1528_s5, %s1200_s19  ;;  %p1204_p9 = scmp.lt.u32.totalorder %s1200_s19, %s1528_s5 }
  0x19   :  { %p1206_p10 = pnand %p1204_p9, %p1201_p8 }
  0x1b   :  { %1209 = shalt.err (!%p1206_p10)
}
  0x1c   :  { %s1210_s1 = scalar_lea.vmem %s64_s13, 1024  ;;  %p1215_p12 = scmp.lt.s32.totalorder %s64_s13, %s64_s13 }
  0x1d   :  { %p1211_p11 = scmp.ne.s32.totalorder %s64_s13, %s1210_s1  ;;  %p1216_p13 = scmp.lt.s32.totalorder %s1210_s1, %s1210_s1 }
  0x1f   :  { %p1217_p0 = por %p1216_p13, %p1215_p12 }
  0x21   :  { %p1218_p1 = pnand %p1217_p0, %p1211_p11 }
  0x23   :  { %1221 = shalt.err (!%p1218_p1)
}
  0x24   :  { %s1323_s18 = smov 64   ;;  %s1324_s24 = smov 4  }
  0x25   :  { %69 = dma.hbm_to_vmem [thread:$0]  %s1528_s5, 1024, %s64_s13, [#allocation8], %s1323_s18, %s1323_s18, %s1324_s24  }
  0x26   :  { %s1222_s29 = scalar_lea.hbm %s1523_s0, 256 }
  0x27   :  { %p1223_p2 = scmp.ne.s32.totalorder %s1523_s0, %s1222_s29  ;;  %p1226_p3 = scmp.lt.u32.totalorder %s1222_s29, %s1523_s0 }
  0x29   :  { %p1228_p4 = pnand %p1226_p3, %p1223_p2 }
  0x2b   :  { %1231 = shalt.err (!%p1228_p4)
}
  0x2c   :  { %s1232_s17 = scalar_lea.vmem %s27_s15, 256  ;;  %p1237_p6 = scmp.lt.s32.totalorder %s27_s15, %s27_s15 }
  0x2d   :  { %p1233_p5 = scmp.ne.s32.totalorder %s27_s15, %s1232_s17  ;;  %p1238_p7 = scmp.lt.s32.totalorder %s1232_s17, %s1232_s17 }
  0x2f   :  { %p1239_p8 = por %p1238_p7, %p1237_p6 }
  0x31   :  { %p1240_p9 = pnand %p1239_p8, %p1233_p5 }
  0x33   :  { %1243 = shalt.err (!%p1240_p9)
}
  0x34   :  { %29 = dma.hbm_to_vmem [thread:$0]  %s1523_s0, 256, %s27_s15, [#allocation3]  }
  0x35   :  { %s1325_s19 = smov [#allocation6]   ;;  %s1326_s21 = smov [#allocation9]  }
  0x36   :  { %s49_s20 = sshll.u32 %s1325_s19, 4  ;;  %s77_s22 = sshll.u32 %s1326_s21, 4  ;;  %s50_s20 = int_to_ptr.vmem [resolvable:$true] %s49_s20  ;;  %s78_s22 = int_to_ptr.vmem [resolvable:$true] %s77_s22 }
  0x37   :  { %s1244_s25 = scalar_lea.hbm %s1526_s3, 2048 }
  0x38   :  { %p1245_p10 = scmp.ne.s32.totalorder %s1526_s3, %s1244_s25  ;;  %p1248_p11 = scmp.lt.u32.totalorder %s1244_s25, %s1526_s3 }
  0x3a   :  { %p1250_p12 = pnand %p1248_p11, %p1245_p10 }
  0x3c   :  { %1253 = shalt.err (!%p1250_p12)
}
  0x3d   :  { %s1254_s0 = scalar_lea.vmem %s50_s20, 2048  ;;  %p1259_p0 = scmp.lt.s32.totalorder %s50_s20, %s50_s20 }
  0x3e   :  { %p1255_p13 = scmp.ne.s32.totalorder %s50_s20, %s1254_s0  ;;  %p1260_p1 = scmp.lt.s32.totalorder %s1254_s0, %s1254_s0 }
  0x40   :  { %p1261_p2 = por %p1260_p1, %p1259_p0 }
  0x42   :  { %p1262_p3 = pnand %p1261_p2, %p1255_p13 }
  0x44   :  { %1265 = shalt.err (!%p1262_p3)
}
  0x45   :  { %55 = dma.hbm_to_vmem [thread:$0]  %s1526_s3, 2048, %s50_s20, [#allocation5], %s1323_s18, %s1323_s18, %s1324_s24  }
  0x46   :  { %s1266_s16 = scalar_lea.hbm %s1530_s7, 1024 }
  0x47   :  { %p1267_p4 = scmp.ne.s32.totalorder %s1530_s7, %s1266_s16  ;;  %p1270_p5 = scmp.lt.u32.totalorder %s1266_s16, %s1530_s7 }
  0x49   :  { %p1272_p6 = pnand %p1270_p5, %p1267_p4 }
  0x4b   :  { %1275 = shalt.err (!%p1272_p6)
}
  0x4c   :  { %s1276_s21 = scalar_lea.vmem %s78_s22, 1024  ;;  %p1281_p8 = scmp.lt.s32.totalorder %s78_s22, %s78_s22 }
  0x4d   :  { %p1277_p7 = scmp.ne.s32.totalorder %s78_s22, %s1276_s21  ;;  %p1282_p9 = scmp.lt.s32.totalorder %s1276_s21, %s1276_s21 }
  0x4f   :  { %p1283_p10 = por %p1282_p9, %p1281_p8 }
  0x51   :  { %p1284_p11 = pnand %p1283_p10, %p1277_p7 }
  0x53   :  { %1287 = shalt.err (!%p1284_p11)
}
  0x54   :  { %83 = dma.hbm_to_vmem [thread:$0]  %s1530_s7, 1024, %s78_s22, [#allocation8], %s1323_s18, %s1323_s18, %s1324_s24  }
  0x55   :  { %s1327_s23 = smov [#allocation10]   ;;  %s1288_s27 = scalar_lea.hbm %s1532_s9, 1024 }
  0x56   :  { %s91_s1 = sshll.u32 %s1327_s23, 4  ;;  %p1289_p12 = scmp.ne.s32.totalorder %s1532_s9, %s1288_s27  ;;  %s92_s1 = int_to_ptr.vmem [resolvable:$true] %s91_s1 }
  0x57   :  { %p1292_p13 = scmp.lt.u32.totalorder %s1288_s27, %s1532_s9 }
  0x59   :  { %p1294_p0 = pnand %p1292_p13, %p1289_p12 }
  0x5b   :  { %1297 = shalt.err (!%p1294_p0)
}
  0x5c   :  { %s1298_s30 = scalar_lea.vmem %s92_s1, 1024  ;;  %p1303_p2 = scmp.lt.s32.totalorder %s92_s1, %s92_s1 }
  0x5d   :  { %p1299_p1 = scmp.ne.s32.totalorder %s92_s1, %s1298_s30  ;;  %p1304_p3 = scmp.lt.s32.totalorder %s1298_s30, %s1298_s30 }
  0x5f   :  { %p1305_p4 = por %p1304_p3, %p1303_p2 }
  0x61   :  { %p1306_p5 = pnand %p1305_p4, %p1299_p1 }
  0x63   :  { %1309 = shalt.err (!%p1306_p5)
}
  0x64   :  { %97 = dma.hbm_to_vmem [thread:$0]  %s1532_s9, 1024, %s92_s1, [#allocation11], %s1323_s18, %s1323_s18, %s1324_s24  }
  0x65   :  { %1310 = dma.done.wait [#allocation3], 256  }
  0x66   :  { %1311 = vsyncadd [#allocation3], 4294967040 }
  0x67   :  { %1312 = dma.done.wait [#allocation5], 5760  }
  0x68   :  { %1313 = vsyncadd [#allocation5], 4294961536 }
  0x69   :  { %1314 = dma.done.wait [#allocation8], 2048  }
  0x6a   :  { %1315 = vsyncadd [#allocation8], 4294965248 }
  0x6b   :  { %1316 = dma.done.wait [#allocation11], 1024  }
  0x6c   :  { %1317 = vsyncadd [#allocation11], 4294966272  ;;  %v1088_v0 = vld [vmem:[#allocation4 + $0x4] ss:$8 sps:$4 sm:$0xff]   ;;  %v1090_v1 = vld [vmem:[#allocation4] ss:$8 sps:$4 sm:$0xff]   ;;  %v154_v57 = vlaneseq }
  0x6d   :  { %323 = vmatprep.subr.bf16.mxu0 %v1088_v0  ;;  %v1091_v2 = vld [vmem:[#allocation4 + $0x14] ss:$8 sps:$4 sm:$0xff]   ;;  %v1093_v3 = vld [vmem:[#allocation4 + $0x10] ss:$8 sps:$4 sm:$0xff]   ;;  %v1094_v4 = vld [vmem:[#allocation4 + $0x24] ss:$8 sps:$4 sm:$0xff]  }
  0x6e   :  { %324 = vmatpush1.bf16.msra.mxu0 %v1090_v1  ;;  %v1096_v5 = vld [vmem:[#allocation4 + $0x20] ss:$8 sps:$4 sm:$0xff]   ;;  %v1097_v6 = vld [vmem:[#allocation4 + $0x34] ss:$8 sps:$4 sm:$0xff]   ;;  %v1099_v7 = vld [vmem:[#allocation4 + $0x30] ss:$8 sps:$4 sm:$0xff]  }
  0x6f   :  { %325 = vmatprep.subr.bf16.mxu0 %v1091_v2  ;;  %v1100_v8 = vld [vmem:[#allocation4 + $0x44] ss:$8 sps:$4 sm:$0xff]   ;;  %v1102_v9 = vld [vmem:[#allocation4 + $0x40] ss:$8 sps:$4 sm:$0xff]   ;;  %v1103_v10 = vld [vmem:[#allocation4 + $0x54] ss:$8 sps:$4 sm:$0xff]  }
  0x70   :  { %v1105_v11 = vld [vmem:[#allocation4 + $0x50] ss:$8 sps:$4 sm:$0xff]   ;;  %v1106_v12 = vld [vmem:[#allocation4 + $0x64] ss:$8 sps:$4 sm:$0xff]   ;;  %vm309_vm0 = vcmask 842752   ;;  %vm313_vm1 = vcmask 1042432  }
  0x71   :  { %v120_v13 = vld [vmem:[#allocation2 + $0x8] sm:$0xff]  ;;  %v1132_v15 = vld [vmem:[#allocation6 + $0x40] sm:$0xff]   ;;  %v1134_v19 = vld [vmem:[#allocation6 + $0x48] sm:$0xff]   ;;  %vm314_vm2 = vcmask 1043456   ;;  %v1328_v25 = vmov 65535   ;;  %v1329_v56 = vmov 0.0  }
  0x72   :  { %326 = vmatpush1.bf16.msra.mxu0 %v1093_v3  ;;  %v122_v14 = vpack.c.bf16 %v120_v13, %v120_v13  ;;  %v1108_v16 = vld [vmem:[#allocation4 + $0x60] ss:$8 sps:$4 sm:$0xff]   ;;  %v1109_v18 = vld [vmem:[#allocation4 + $0x74] ss:$8 sps:$4 sm:$0xff]   ;;  %966 = vmatprep.subr.bf16.mxu1 %v1132_v15  ;;  %v1111_v22 = vld [vmem:[#allocation4 + $0x70] ss:$8 sps:$4 sm:$0xff]  }
  0x73   :  { %327 = vmatprep.subr.bf16.mxu0 %v1094_v4  ;;  %v1133_v17 = vld [vmem:[#allocation6] sm:$0xff]   ;;  %v1135_v20 = vld [vmem:[#allocation6 + $0x8] sm:$0xff]   ;;  %v1136_v21 = vld [vmem:[#allocation6 + $0x50] sm:$0xff]   ;;  %v315_v26 = vsel %vm313_vm1, 4294967295, %v1328_v25  ;;  %v155_v58 = vshrl.u32 %v154_v57, 7  ;;  %vm1330_vm3 = vmmov 0  }
  0x74   :  { %921 = vmatprep.mubr.msk.bf16.mxu0 %vm309_vm0, %v122_v14  ;;  %967 = vmatpush3.bf16.msra.mxu1 %v1133_v17  ;;  %v1112_v23 = vld [vmem:[#allocation4 + $0x84] ss:$8 sps:$4 sm:$0xff]   ;;  %v1137_v24 = vld [vmem:[#allocation6 + $0x10] sm:$0xff]   ;;  %v1114_v28 = vld [vmem:[#allocation4 + $0x80] ss:$8 sps:$4 sm:$0xff]   ;;  %v316_v30 = vsel %vm314_vm2, %v315_v26, 0 }
  0x75   :  { %968 = vmatprep.subr.bf16.mxu1 %v1134_v19  ;;  %v1138_v27 = vld [vmem:[#allocation6 + $0x58] sm:$0xff]   ;;  %v1115_v29 = vld [vmem:[#allocation4 + $0x94] ss:$8 sps:$4 sm:$0xff]   ;;  %v1140_v32 = vld [vmem:[#allocation6 + $0x60] sm:$0xff]   ;;  %v156_v59 = vsub.s32 0, %v155_v58  ;;  %v160_v61 = vsub.s32 1, %v155_v58 }
  0x76   :  { %328 = vmatpush1.bf16.msra.mxu0 %v1096_v5  ;;  %v1139_v31 = vld [vmem:[#allocation6 + $0x18] sm:$0xff]   ;;  %v1117_v33 = vld [vmem:[#allocation4 + $0x90] ss:$8 sps:$4 sm:$0xff]   ;;  %v1141_v34 = vld [vmem:[#allocation6 + $0x20] sm:$0xff]  }
  0x77   :  { %329 = vmatprep.subr.bf16.mxu0 %v1097_v6  ;;  %v1118_v35 = vld [vmem:[#allocation4 + $0xa4] ss:$8 sps:$4 sm:$0xff]   ;;  %v1142_v36 = vld [vmem:[#allocation6 + $0x68] sm:$0xff]   ;;  %v1120_v37 = vld [vmem:[#allocation4 + $0xa0] ss:$8 sps:$4 sm:$0xff]  }
  0x78   :  { %969 = vmatpush3.bf16.msra.mxu1 %v1135_v20  ;;  %v1143_v38 = vld [vmem:[#allocation6 + $0x28] sm:$0xff]   ;;  %v1124_v41 = vld [vmem:[#allocation4 + $0xc4] ss:$8 sps:$4 sm:$0xff]   ;;  %v1126_v43 = vld [vmem:[#allocation4 + $0xc0] ss:$8 sps:$4 sm:$0xff]  }
  0x79   :  { %970 = vmatprep.subr.bf16.mxu1 %v1136_v21  ;;  %v1121_v39 = vld [vmem:[#allocation4 + $0xb4] ss:$8 sps:$4 sm:$0xff]   ;;  %v1123_v40 = vld [vmem:[#allocation4 + $0xb0] ss:$8 sps:$4 sm:$0xff]   ;;  %v151_v42 = vld [vmem:[#allocation4 + $0xe0] sm:$0xff] }
  0x7a   :  { %330 = vmatpush1.bf16.msra.mxu0 %v1099_v7  ;;  %v1127_v44 = vld [vmem:[#allocation4 + $0xd4] ss:$8 sps:$4 sm:$0xff]   ;;  %v920_v45 = vcombine.high %v151_v42, %v151_v42  ;;  %v1129_v46 = vld [vmem:[#allocation4 + $0xd0] ss:$8 sps:$4 sm:$0xff]   ;;  %v919_v47 = vcombine.low %v151_v42, %v151_v42  ;;  %v1146_v54 = vld [vmem:[#allocation6 + $0x78] sm:$0xff]  }
  0x7b   :  { %331 = vmatprep.subr.bf16.mxu0 %v1100_v8  ;;  %v119_v50 = vld [vmem:[#allocation2] sm:$0xff]  ;;  %v1144_v52 = vld [vmem:[#allocation6 + $0x70] sm:$0xff]   ;;  %v1147_v55 = vld [vmem:[#allocation6 + $0x38] sm:$0xff]  }
  0x7c   :  { %971 = vmatpush3.bf16.msra.mxu1 %v1137_v24  ;;  %v321_v48 = vand.u32 %v920_v45, %v316_v30  ;;  %v318_v49 = vand.u32 %v919_v47, %v316_v30  ;;  %v121_v51 = vpack.c.bf16 %v119_v50, %v119_v50  ;;  %v1145_v53 = vld [vmem:[#allocation6 + $0x30] sm:$0xff]   ;;  %v152_v60 = vld [vmem:[%s1525_s2] sm:$0x3]  ;;  %v1151_v13 = vld [vmem:[#allocation7 + $0x18] sm:$0xff]  }
  0x7d   :  { %972 = vmatprep.subr.bf16.mxu1 %v1138_v27  ;;  %v157_v62 = vrot.slane %v152_v60, %v156_v59  ;;  %v161_v63 = vrot.slane %v152_v60, %v160_v61  ;;  %v1152_v14 = vld [vmem:[#allocation7 + $0x20] sm:$0xff]   ;;  %v1153_v15 = vld [vmem:[#allocation7 + $0x28] sm:$0xff]   ;;  %v1155_v17 = vld [vmem:[#allocation7 + $0x38] sm:$0xff]  }
  0x7e   :  { %332 = vmatpush1.bf16.msra.mxu0 %v1102_v9  ;;  %v1148_v9 = vld [vmem:[#allocation7] sm:$0xff]   ;;  %v1157_v19 = vld [vmem:[#allocation9 + $0x8] sm:$0xff]   ;;  %v1158_v20 = vld [vmem:[#allocation9 + $0x10] sm:$0xff]  }
  0x7f   :  { %333 = vmatprep.subr.bf16.mxu0 %v1103_v10  ;;  %v1159_v21 = vld [vmem:[#allocation9 + $0x18] sm:$0xff]   ;;  %v1168_v47 = vld [vmem:[#allocation10 + $0x20] sm:$0xff]   ;;  %v957_v60 = vld [vmem:[%s1533_s10] ss:$0 sm:$0xff] }
  0x80   :  { %973 = vmatpush3.bf16.msra.mxu1 %v1139_v31  ;;  %v1160_v31 = vld [vmem:[#allocation9 + $0x20] sm:$0xff]   ;;  %v1171_v50 = vld [vmem:[#allocation10 + $0x38] sm:$0xff]  }
  0x81   :  { %974 = vmatprep.subr.bf16.mxu1 %v1140_v32  ;;  %v1161_v32 = vld [vmem:[#allocation9 + $0x28] sm:$0xff]  }
  0x82   :  { %334 = vmatpush1.bf16.msra.mxu0 %v1105_v11  ;;  %v1149_v11 = vld [vmem:[#allocation7 + $0x8] sm:$0xff]  }
  0x83   :  { %335 = vmatprep.subr.bf16.mxu0 %v1106_v12  ;;  %v1150_v12 = vld [vmem:[#allocation7 + $0x10] sm:$0xff]  }
  0x84   :  { %975 = vmatpush3.bf16.msra.mxu1 %v1141_v34  ;;  %v1163_v34 = vld [vmem:[#allocation9 + $0x38] sm:$0xff]  }
  0x85   :  { %976 = vmatprep.subr.bf16.mxu1 %v1142_v36  ;;  %v1165_v36 = vld [vmem:[#allocation10 + $0x8] sm:$0xff]  }
  0x86   :  { %336 = vmatpush1.bf16.msra.mxu0 %v1108_v16  ;;  %v1154_v16 = vld [vmem:[#allocation7 + $0x30] sm:$0xff]  }
  0x87   :  { %337 = vmatprep.subr.bf16.mxu0 %v1109_v18  ;;  %v1156_v18 = vld [vmem:[#allocation9] sm:$0xff]  }
  0x88   :  { %977 = vmatpush3.bf16.msra.mxu1 %v1143_v38  ;;  %v1167_v38 = vld [vmem:[#allocation10 + $0x18] sm:$0xff]  }
  0x89   :  { %978 = vmatprep.subr.bf16.mxu1 %v1144_v52 }
  0x8a   :  { %338 = vmatpush1.bf16.msra.mxu0 %v1111_v22 }
  0x8b   :  { %339 = vmatprep.subr.bf16.mxu0 %v1112_v23  ;;  %v922_v23 = vld [vmem:[%s1527_s4] ss:$0 sm:$0xff] }
  0x8c   :  { %979 = vmatpush3.bf16.msra.mxu1 %v1145_v53 }
  0x8d   :  { %980 = vmatprep.subr.bf16.mxu1 %v1146_v54 }
  0x8e   :  { %340 = vmatpush1.bf16.msra.mxu0 %v1114_v28 }
  0x8f   :  { %341 = vmatprep.subr.bf16.mxu0 %v1115_v29 }
  0x90   :  { %981 = vmatpush3.bf16.msra.mxu1 %v1147_v55 }
  0x91   :  { %1015 = vmatprep.subr.bf16.mxu1 %v1329_v56 }
  0x92   :  { %342 = vmatpush1.bf16.msra.mxu0 %v1117_v33  ;;  %v1162_v33 = vld [vmem:[#allocation9 + $0x30] sm:$0xff]  }
  0x93   :  { %343 = vmatprep.subr.bf16.mxu0 %v1118_v35  ;;  %v1164_v35 = vld [vmem:[#allocation10] sm:$0xff]  }
  0x96   :  { %344 = vmatpush1.bf16.msra.mxu0 %v1120_v37  ;;  %v1166_v37 = vld [vmem:[#allocation10 + $0x10] sm:$0xff]  }
  0x97   :  { %345 = vmatprep.subr.bf16.mxu0 %v1121_v39  ;;  %v939_v39 = vld [vmem:[%s1529_s6] ss:$0 sm:$0xff] }
  0x9a   :  { %346 = vmatpush1.bf16.msra.mxu0 %v1123_v40 }
  0x9b   :  { %347 = vmatprep.subr.bf16.mxu0 %v1124_v41 }
  0x9e   :  { %348 = vmatpush1.bf16.msra.mxu0 %v1126_v43 }
  0x9f   :  { %349 = vmatprep.subr.bf16.mxu0 %v1127_v44 }
  0xa2   :  { %350 = vmatpush1.bf16.msra.mxu0 %v1129_v46 }
  0xa3   :  { %351 = vmatprep.subr.bf16.mxu0 %v321_v48  ;;  %v1169_v48 = vld [vmem:[#allocation10 + $0x28] sm:$0xff]  }
  0xa6   :  { %352 = vmatpush1.bf16.msra.mxu0 %v318_v49  ;;  %v1170_v49 = vld [vmem:[#allocation10 + $0x30] sm:$0xff]  }
  0xa7   :  { %1035 = vmatprep.subr.bf16.mxu0 %v1329_v56 }
  0xa9   :  { %356 = vmatmul.mubr.bf16.vlgmr.msra.gmra.mrb[0].mxu0 %v121_v51  ;;  %v948_v51 = vld [vmem:[%s1531_s8] ss:$0 sm:$0xff] }
  0xaa   :  { %1051 = vmatprep.mubr.msk.bf16.mxu0 %vm1330_vm3, %v1329_v56  ;;  %1036 = vmatpush3.bf16.msra.mxu0 %v1156_v18 }
  0xab   :  { %1037 = vmatprep.subr.bf16.mxu0 %v1329_v56 }
  0xae   :  { %1038 = vmatpush3.bf16.msra.mxu0 %v1157_v19 }
  0xaf   :  { %1039 = vmatprep.subr.bf16.mxu0 %v1329_v56 }
  0xb2   :  { %1040 = vmatpush3.bf16.msra.mxu0 %v1158_v20 }
  0xb3   :  { %1041 = vmatprep.subr.bf16.mxu0 %v1329_v56 }
  0xb6   :  { %1042 = vmatpush3.bf16.msra.mxu0 %v1159_v21 }
  0xb7   :  { %1043 = vmatprep.subr.bf16.mxu0 %v1329_v56 }
  0xba   :  { %1044 = vmatpush3.bf16.msra.mxu0 %v1160_v31 }
  0xbb   :  { %1045 = vmatprep.subr.bf16.mxu0 %v1329_v56 }
  0xbe   :  { %1046 = vmatpush3.bf16.msra.mxu0 %v1161_v32 }
  0xbf   :  { %1047 = vmatprep.subr.bf16.mxu0 %v1329_v56 }
  0xc2   :  { %1048 = vmatpush3.bf16.msra.mxu0 %v1162_v33 }
  0xc3   :  { %1049 = vmatprep.subr.bf16.mxu0 %v1329_v56 }
  0xc6   :  { %1050 = vmatpush3.bf16.msra.mxu0 %v1163_v34 }
 0x17c   :  { %v357_v0 = vpop.f32.mrb[0].mxu0 }
 0x17d   :  { %v358_v1 = vadd.f32 %v357_v0, %v157_v62  ;;  %v359_v2 = vpop.f32.mrb[1].mxu0 }
 0x17e   :  { %v360_v3 = vadd.f32 %v359_v2, %v161_v63  ;;  %v361_v4 = vpop.f32.mrb[2].mxu0 }
 0x17f   :  { %v364_v5 = vmax.f32 %v358_v1, 0.0  ;;  %v362_v6 = vpop.f32.mrb[3].mxu0 }
 0x180   :  { %v365_v7 = vmax.f32 %v360_v3, 0.0 }
 0x181   :  { %v366_v10 = vpack.c.bf16 %v364_v5, %v364_v5 }
 0x182   :  { %v367_v8 = vpack.c.bf16 %v365_v7, %v365_v7 }
 0x184   :  { %535 = vmatprep.mubr.bf16.mxu1 %v367_v8 }
 0x185   :  { %536 = vmatmul.mubr.bf16.vlgmr.msra.gmra.mrb[0].mxu1 %v366_v10 }
 0x186   :  { %1016 = vmatpush3.bf16.msra.mxu1 %v1148_v9  ;;  %1031 = vmatprep.mubr.msk.bf16.mxu1 %vm1330_vm3, %v1329_v56 }
 0x187   :  { %1017 = vmatprep.subr.bf16.mxu1 %v1329_v56 }
 0x18a   :  { %1018 = vmatpush3.bf16.msra.mxu1 %v1149_v11 }
 0x18b   :  { %1019 = vmatprep.subr.bf16.mxu1 %v1329_v56 }
 0x18e   :  { %1020 = vmatpush3.bf16.msra.mxu1 %v1150_v12 }
 0x18f   :  { %1021 = vmatprep.subr.bf16.mxu1 %v1329_v56 }
 0x192   :  { %1022 = vmatpush3.bf16.msra.mxu1 %v1151_v13 }
 0x193   :  { %1023 = vmatprep.subr.bf16.mxu1 %v1329_v56 }
 0x196   :  { %1024 = vmatpush3.bf16.msra.mxu1 %v1152_v14 }
 0x197   :  { %1025 = vmatprep.subr.bf16.mxu1 %v1329_v56 }
 0x19a   :  { %1026 = vmatpush3.bf16.msra.mxu1 %v1153_v15 }
 0x19b   :  { %1027 = vmatprep.subr.bf16.mxu1 %v1329_v56 }
 0x19e   :  { %1028 = vmatpush3.bf16.msra.mxu1 %v1154_v16 }
 0x19f   :  { %1029 = vmatprep.subr.bf16.mxu1 %v1329_v56 }
 0x1a2   :  { %1030 = vmatpush3.bf16.msra.mxu1 %v1155_v17 }
 0x1a3   :  { %1055 = vmatprep.subr.bf16.mxu1 %v1329_v56 }
 0x258   :  { %v982_v22 = vpop.f32.mrb[0].mxu1 }
 0x259   :  { %v983_v24 = vpop.f32.mrb[1].mxu1 }
 0x25a   :  { %v984_v25 = vadd.f32 %v983_v24, %v982_v22  ;;  %v985_v26 = vpop.f32.mrb[2].mxu1 }
 0x25b   :  { %v986_v27 = vpop.f32.mrb[3].mxu1 }
 0x25c   :  { %v538_v28 = vadd.f32 %v984_v25, %v922_v23 }
 0x25e   :  { %1172 = vtanh.f32 %v538_v28 }
 0x268   :  { %v1173_v29 = vpop.eup %1172 }
 0x269   :  { %v544_v30 = vpack.c.bf16 %v1173_v29, %v1173_v29 }
 0x26b   :  { %1032 = vmatmul.mubr.bf16.vlgmr.msra.gmra.mrb[4].mxu1 %v544_v30 }
 0x26c   :  { %1071 = vmatprep.mubr.msk.bf16.mxu1 %vm1330_vm3, %v1329_v56  ;;  %1056 = vmatpush3.bf16.msra.mxu1 %v1164_v35 }
 0x26d   :  { %1057 = vmatprep.subr.bf16.mxu1 %v1329_v56 }
 0x270   :  { %1058 = vmatpush3.bf16.msra.mxu1 %v1165_v36 }
 0x271   :  { %1059 = vmatprep.subr.bf16.mxu1 %v1329_v56 }
 0x274   :  { %1060 = vmatpush3.bf16.msra.mxu1 %v1166_v37 }
 0x275   :  { %1061 = vmatprep.subr.bf16.mxu1 %v1329_v56 }
 0x278   :  { %1062 = vmatpush3.bf16.msra.mxu1 %v1167_v38 }
 0x279   :  { %1063 = vmatprep.subr.bf16.mxu1 %v1329_v56 }
 0x27c   :  { %1064 = vmatpush3.bf16.msra.mxu1 %v1168_v47 }
 0x27d   :  { %1065 = vmatprep.subr.bf16.mxu1 %v1329_v56 }
 0x280   :  { %1066 = vmatpush3.bf16.msra.mxu1 %v1169_v48 }
 0x281   :  { %1067 = vmatprep.subr.bf16.mxu1 %v1329_v56 }
 0x284   :  { %1068 = vmatpush3.bf16.msra.mxu1 %v1170_v49 }
 0x285   :  { %1069 = vmatprep.subr.bf16.mxu1 %v1329_v56 }
 0x288   :  { %1070 = vmatpush3.bf16.msra.mxu1 %v1171_v50 }
 0x33e   :  { %v650_v40 = vpop.f32.mrb[4].mxu1 }
 0x33f   :  { %v651_v41 = vadd.f32 %v939_v39, %v650_v40  ;;  %v1033_v42 = vpop.f32.mrb[5].mxu1 }
 0x340   :  { %v653_v43 = vpop.f32.mrb[6].mxu1 }
 0x341   :  { %1174 = vtanh.f32 %v651_v41  ;;  %v1034_v44 = vpop.f32.mrb[7].mxu1 }
 0x34b   :  { %v1175_v45 = vpop.eup %1174 }
 0x34c   :  { %v657_v46 = vpack.c.bf16 %v1175_v45, %v1175_v45 }
 0x34e   :  { %1052 = vmatmul.mubr.bf16.vlgmr.msra.gmra.mrb[4].mxu0 %v657_v46 }
 0x421   :  { %v763_v52 = vpop.f32.mrb[4].mxu0 }
 0x422   :  { %v764_v53 = vadd.f32 %v948_v51, %v763_v52  ;;  %v1053_v54 = vpop.f32.mrb[5].mxu0 }
 0x423   :  { %v766_v55 = vpop.f32.mrb[6].mxu0 }
 0x424   :  { %1176 = vtanh.f32 %v764_v53  ;;  %v1054_v57 = vpop.f32.mrb[7].mxu0 }
 0x42e   :  { %v1177_v58 = vpop.eup %1176 }
 0x42f   :  { %v770_v59 = vpack.c.bf16 %v1177_v58, %v1177_v58 }
 0x431   :  { %1072 = vmatmul.mubr.bf16.vlgmr.msra.gmra.mrb[8].mxu1 %v770_v59 }
 0x504   :  { %v876_v56 = vpop.f32.mrb[8].mxu1 }
 0x505   :  { %v877_v61 = vadd.f32 %v957_v60, %v876_v56  ;;  %v1073_v62 = vpop.f32.mrb[9].mxu1 }
 0x506   :  { %v879_v63 = vpop.f32.mrb[10].mxu1 }
 0x507   :  { %882 = vst [vmem:[%s1534_s11] sm:$0xff] %v877_v61  ;;  %v1074_v0 = vpop.f32.mrb[11].mxu1 }
 0x508   :  { %887 = vsyncpa [#allocation3], 1 }
 0x509   :  { %888 = vsyncpa [#allocation5], 1 }
 0x50a   :  { %889 = vsyncpa [#allocation8], 1 }
 0x50b   :  { %890 = vsyncpa [#allocation11], 1 }

</bundles_post_ra>
